<compile_context>
chip_gen: v7x
topology: tpu7x:2x2x1
jax: 0.10.0
libtpu: 0.0.40
codegen_flags: <defaults>
</compile_context>

<pallas_src>
import math
from functools import partial

import jax
import jax.numpy as jnp
import numpy as np
from jax.experimental import pallas as pl
from jax.experimental.pallas import tpu as pltpu


_COL_CANDIDATES = (1024, 512, 256, 128)   # lane-dense last-dim choices
_MIN_GRID_BLOCKS = 4                      # keep the BlockSpec pipeline busy


# ---------------------------------------------------------------------------
# Geometry helpers
# ---------------------------------------------------------------------------

_BUDGET_CACHE = None


def _budget():
    """(target block bytes per buffer, scoped-VMEM limit), per TPU generation."""
    global _BUDGET_CACHE
    if _BUDGET_CACHE is None:
        vmem = None
        try:
            info = pltpu.get_tpu_info()
            vmem = getattr(info, "vmem_capacity_bytes", None)
        except Exception:
            vmem = None
        if vmem is not None and vmem <= 96 * 1024 * 1024:
            # v7x-class: 64 MiB VMEM, ~3.2 TB/s HBM -> bigger blocks, higher limit.
            _BUDGET_CACHE = (8 * 1024 * 1024, 48 * 1024 * 1024)
        else:
            # v5e / v6e (128 MiB physical VMEM): 4 MiB blocks, explicit 32 MiB limit
            # (v5e scoped default is only 16 MiB).
            _BUDGET_CACHE = (4 * 1024 * 1024, 32 * 1024 * 1024)
    return _BUDGET_CACHE


def _sublane(itemsize):
    return 8 * max(1, 4 // itemsize)      # 8 f32, 16 bf16, 32 int8


def _slab_view(x):
    """Free reshape to a lane-dense (rows, cols) slab; pads only if total % 128 != 0."""
    total = x.size
    itemsize = jnp.dtype(x.dtype).itemsize
    cols = None
    for c in _COL_CANDIDATES:
        if total % c == 0:
            cols = c
            break
    xf = x.reshape(-1)
    if cols is None:
        # TODO(synk): ragged (total % 128 != 0) path pays one extra HBM round trip
        # for the pad + slice; a 1-D masked tail kernel would remove it.
        cols = 128
        padded = -(-total // cols) * cols
        xf = jnp.pad(xf, (0, padded - total))
    rows = xf.size // cols
    return xf.reshape(rows, cols), rows, cols, total, itemsize


def _row_block(rows, cols, itemsize, target_bytes):
    """Row-block size: sublane multiple, ~target bytes, >= _MIN_GRID_BLOCKS steps."""
    sub = _sublane(itemsize)
    if rows <= sub:
        return rows                       # tiny tensor: one full block
    budget = max(sub, (target_bytes // (itemsize * cols)) // sub * sub)
    cap = -(-rows // _MIN_GRID_BLOCKS)    # ceil(rows / MIN_GRID_BLOCKS)
    cap = max(sub, -(-cap // sub) * sub)  # round up to sublane multiple
    return min(budget, cap)


# ---------------------------------------------------------------------------
# Kernels (elementwise quant paths + tiled mean(|x|) reduction for LSQ init)
# ---------------------------------------------------------------------------

def _sat_kernel(alpha_ref, x_ref, o_ref, *, bits):
    # SAT-originalW / SAT-modifiedW activation path:
    #   alpha = |alpha|; y = relu(x); y = min(y, alpha); y /= alpha
    #   y = round((2^bits - 1) * y) / (2^bits - 1); y *= alpha
    alpha = jnp.abs(alpha_ref[0, 0])          # scalar (SMEM)
    inv_alpha = 1.0 / alpha                   # one scalar divide per block
    ei = float((1 << bits) - 1)
    inv_ei = 1.0 / ei
    x = x_ref[...].astype(jnp.float32)
    y = jnp.maximum(x, 0.0)
    y = jnp.where(y < alpha, y, alpha)
    y = jnp.round(ei * (y * inv_alpha)) * inv_ei
    o_ref[...] = (y * alpha).astype(o_ref.dtype)


def _yu21_kernel(x_ref, o_ref, *, bits):
    # Yu21: y = clamp(x, 0, 1); y = round((2^bits - 1) * y) / (2^bits - 1)
    ei = float((1 << bits) - 1)
    inv_ei = 1.0 / ei
    x = x_ref[...].astype(jnp.float32)
    y = jnp.clip(x, 0.0, 1.0)
    o_ref[...] = (jnp.round(ei * y) * inv_ei).astype(o_ref.dtype)


def _lsq_kernel(scale_ref, x_ref, o_ref, *, n, p):
    # LSQ forward (LSQSTE.forward):
    #   y = x / (s + 1e-6); y = hardtanh(y, n, p); y = round(y); y *= s
    s = scale_ref[0, 0]                       # scalar (SMEM)
    inv_s = 1.0 / (s + 1e-6)
    x = x_ref[...].astype(jnp.float32)
    y = jnp.clip(x * inv_s, n, p)
    o_ref[...] = (jnp.round(y) * s).astype(o_ref.dtype)


def _pact_kernel(alpha_ref, x_ref, o_ref, *, bits):
    # Sun21 / PACT forward (PACTSTE.forward):
    #   y = clamp(x, 0, alpha); q = (2^bits - 1)/alpha; y = round(y*q)/q
    alpha = alpha_ref[0, 0]                   # scalar (SMEM)
    ei = float((1 << bits) - 1)
    q = ei / alpha
    inv_q = alpha * (1.0 / ei)
    x = x_ref[...].astype(jnp.float32)
    y = jnp.clip(x, 0.0, alpha)
    o_ref[...] = (jnp.round(y * q) * inv_q).astype(o_ref.dtype)


def _meanabs_kernel(x_ref, o_ref, acc_ref, *, block_rows, acc_rows,
                    valid_rows, need_mask, inv_count):
    # Tiled sum(|x|): per-step pure VPU adds into a vector-shaped accumulator;
    # the single cross-lane reduction + 1/N scale happen only on the last step.
    i = pl.program_id(0)

    @pl.when(i == 0)
    def _():
        acc_ref[...] = jnp.zeros_like(acc_ref)

    x = jnp.abs(x_ref[...].astype(jnp.float32))           # (block_rows, cols)
    if need_mask:
        row = jax.lax.broadcasted_iota(jnp.int32, x.shape, 0) + i * block_rows
        x = jnp.where(row < valid_rows, x, 0.0)
    if block_rows > acc_rows:
        # Sublane-tile-aligned fold to (acc_rows, cols): elementwise vreg adds.
        x = x.reshape(block_rows // acc_rows, acc_rows, x.shape[1]).sum(axis=0)
    acc_ref[...] += x

    @pl.when(i == pl.num_programs(0) - 1)
    def _():
        o_ref[...] = jnp.sum(acc_ref[...], keepdims=True) * inv_count


# ---------------------------------------------------------------------------
# pallas_call wrappers
# ---------------------------------------------------------------------------

def _run_elementwise(kernel, x, scalar=None):
    """Run an elementwise quantization kernel over x (any shape, any rank)."""
    orig_shape = x.shape
    x2d, rows, cols, total, itemsize = _slab_view(x)
    target_bytes, vmem_limit = _budget()
    br = _row_block(rows, cols, itemsize, target_bytes)
    grid = (pl.cdiv(rows, br),)

    in_specs = []
    args = []
    if scalar is not None:
        # (1,1) f32 parameter kept in SMEM for the whole call (no per-step DMA).
        in_specs.append(pl.BlockSpec(memory_space=pltpu.MemorySpace.SMEM))
        args.append(jnp.asarray(scalar, jnp.float32).reshape(1, 1))
    in_specs.append(pl.BlockSpec((br, cols), lambda i: (i, 0)))
    args.append(x2d)

    y2d = pl.pallas_call(
        kernel,
        out_shape=jax.ShapeDtypeStruct((rows, cols), x.dtype),
        grid=grid,
        in_specs=in_specs,
        out_specs=pl.BlockSpec((br, cols), lambda i: (i, 0)),
        compiler_params=pltpu.CompilerParams(
            dimension_semantics=("parallel",),
            vmem_limit_bytes=vmem_limit),
        cost_estimate=pl.CostEstimate(
            flops=6 * total, transcendentals=0,
            bytes_accessed=2 * total * itemsize),
    )(*args)

    y = y2d.reshape(-1)
    if y.size != total:            # only the rare padded path pays this slice
        y = y[:total]
    return y.reshape(orig_shape)


def _mean_abs(x):
    """mean(|x|) as a tiled Pallas reduction (LSQ scale_factor init)."""
    x2d, rows, cols, total, itemsize = _slab_view(x)
    target_bytes, vmem_limit = _budget()
    sub = _sublane(itemsize)
    br = _row_block(rows, cols, itemsize, target_bytes)
    n_blocks = -(-rows // br)
    acc_rows = br if br < sub else sub
    need_mask = (n_blocks * br != rows)    # padded values (if any) are zero -> inert

    out = pl.pallas_call(
        partial(_meanabs_kernel, block_rows=br, acc_rows=acc_rows,
                valid_rows=rows, need_mask=need_mask, inv_count=1.0 / total),
        out_shape=jax.ShapeDtypeStruct((1, 1), jnp.float32),
        grid=(n_blocks,),
        in_specs=[pl.BlockSpec((br, cols), lambda i: (i, 0))],
        out_specs=pl.BlockSpec((1, 1), lambda i: (0, 0)),
        scratch_shapes=[pltpu.VMEM((acc_rows, cols), jnp.float32)],
        compiler_params=pltpu.CompilerParams(
            dimension_semantics=("arbitrary",),
            vmem_limit_bytes=vmem_limit),
        cost_estimate=pl.CostEstimate(
            flops=2 * total, transcendentals=0,
            bytes_accessed=total * itemsize + 4),
    )(x2d)
    return out[0, 0]


# ---------------------------------------------------------------------------
# JAX-side module mirroring ActivationQuantizer (forward pass only)
# ---------------------------------------------------------------------------

class ActivationQuantizer:
    # TODO(synk): backward/STE gradient rules (LSQSTE/PACTSTE/SATSTE.backward) are
    # not implemented; this mirrors only the forward pass of the nn.Module.
    def __init__(self, method, bits):
        self.method = method
        self.bits = bits
        self.alpha = None
        self.scale_factor = None
        self.scale_factor_grad = None
        if self.bits is not None:
            if self.method in ('SAT-originalW', 'SAT-modifiedW'):
                assert self.bits != 1
                self.alpha = jnp.float32(8.0)          # nn.Parameter(torch.tensor(8.0))
            elif self.method == 'Yu21':
                pass
            elif self.method == 'LSQ':
                assert self.bits != 1
                self.n = 0.0
                self.p = 2.0 ** bits
            elif self.method == 'Sun21':
                self.alpha = jnp.float32(10.0)         # nn.Parameter(torch.tensor(10.0))

    def __call__(self, x):
        if self.bits is None:
            return x                                   # nn.Identity()

        if self.method in ('SAT-originalW', 'SAT-modifiedW'):
            return _run_elementwise(partial(_sat_kernel, bits=self.bits),
                                    x, scalar=self.alpha)
        elif self.method == 'Yu21':
            return _run_elementwise(partial(_yu21_kernel, bits=self.bits), x)
        elif self.method == 'LSQ':
            if self.scale_factor_grad is None:
                self.scale_factor_grad = 1.0 / math.sqrt(x.size * self.p)
            if self.scale_factor is None:
                # 2 * mean(|x|) / sqrt(p), via the tiled Pallas reduction
                self.scale_factor = 2.0 * _mean_abs(x) / math.sqrt(self.p)
            return _run_elementwise(
                partial(_lsq_kernel, n=float(self.n), p=float(self.p)),
                x, scalar=self.scale_factor)
        elif self.method == 'Sun21':
            return _run_elementwise(partial(_pact_kernel, bits=self.bits),
                                    x, scalar=self.alpha)
        else:
            raise ValueError(self.method)


# ---------------------------------------------------------------------------
# Pure-JAX references (for correctness checks)
# ---------------------------------------------------------------------------

def _ref_sat(x, alpha, bits):
    a = jnp.abs(alpha)
    y = jnp.maximum(x, 0.0)
    y = jnp.where(y < a, y, a) / a
    ei = (1 << bits) - 1
    return (jnp.round(ei * y) / ei) * a


def _ref_yu21(x, bits):
    ei = (1 << bits) - 1
    return jnp.round(ei * jnp.clip(x, 0.0, 1.0)) / ei


def _ref_lsq(x, s, n, p):
    y = x / (s + 1e-6)
    return jnp.round(jnp.clip(y, n, p)) * s


def _ref_pact(x, alpha, bits):
    q = (2.0 ** bits - 1.0) / alpha
    return jnp.round(jnp.clip(x, 0.0, alpha) * q) / q


# ---------------------------------------------------------------------------
# Main
# ---------------------------------------------------------------------------

if __name__ == "__main__":
    key = jax.random.PRNGKey(0)
    N, C, H, W = 2, 4, 16, 16
    bits = 4
    # NCHW input, values spanning negative and positive range like post-BN activations
    x = jax.random.normal(key, (N, C, H, W), dtype=jnp.float32) * 2.0

    # SAT
    q_sat = ActivationQuantizer('SAT-originalW', bits)
    y_sat = jax.block_until_ready(q_sat(x))
    np.testing.assert_allclose(np.asarray(y_sat),
                               np.asarray(_ref_sat(x, q_sat.alpha, bits)),
                               rtol=1e-5, atol=1e-5)

    # Yu21
    q_yu = ActivationQuantizer('Yu21', bits)
    y_yu = jax.block_until_ready(q_yu(x))
    np.testing.assert_allclose(np.asarray(y_yu),
                               np.asarray(_ref_yu21(x, bits)),
                               rtol=1e-5, atol=1e-5)

    # LSQ (scale_factor initialized from the first input via tiled Pallas reduction)
    q_lsq = ActivationQuantizer('LSQ', bits)
    y_lsq = jax.block_until_ready(q_lsq(x))
    s_kernel = q_lsq.scale_factor
    s_ref = 2.0 * jnp.mean(jnp.abs(x)) / math.sqrt(2.0 ** bits)
    np.testing.assert_allclose(float(s_kernel), float(s_ref), rtol=1e-5, atol=1e-6)
    np.testing.assert_allclose(np.asarray(y_lsq),
                               np.asarray(_ref_lsq(x, s_kernel, 0.0, 2.0 ** bits)),
                               rtol=1e-5, atol=1e-5)

    # Sun21 (PACT)
    q_pact = ActivationQuantizer('Sun21', bits)
    y_pact = jax.block_until_ready(q_pact(x))
    np.testing.assert_allclose(np.asarray(y_pact),
                               np.asarray(_ref_pact(x, q_pact.alpha, bits)),
                               rtol=1e-5, atol=1e-5)

    # bits=None -> identity
    q_id = ActivationQuantizer('Yu21', None)
    y_id = jax.block_until_ready(q_id(x))
    np.testing.assert_allclose(np.asarray(y_id), np.asarray(x))

    print("KERNEL_OK")
</pallas_src>

<mosaic_0001>
module attributes {stable_mosaic.version = 11 : i64} {
  func.func @_sat_kernel(%arg0: i32, %arg1: memref<1x1xf32, #tpu.memory_space<smem>>, %arg2: memref<2x1024xf32, #tpu.memory_space<vmem>>, %arg3: memref<2x1024xf32, #tpu.memory_space<vmem>>) attributes {dimension_semantics = [#tpu.dimension_semantics<parallel>], iteration_bounds = array<i64: 1>, scalar_prefetch = 0 : i64, scratch_operands = 0 : i64, tpu.core_type = #tpu.core_type<tc>, window_params = [{transform_indices = @transform_0, window_bounds = array<i64: 1, 1>}, {transform_indices = @transform_1, window_bounds = array<i64: 2, 1024>}, {transform_indices = @transform_2, window_bounds = array<i64: 2, 1024>}]} {
    %c0 = arith.constant 0 : index
    %c0_0 = arith.constant 0 : index
    %0 = memref.load %arg1[%c0, %c0_0] : memref<1x1xf32, #tpu.memory_space<smem>>
    %1 = math.absf %0 : f32
    %cst = arith.constant 1.000000e+00 : f32
    %2 = arith.divf %cst, %1 : f32
    %c0_1 = arith.constant 0 : index
    %c0_2 = arith.constant 0 : index
    %3 = vector.load %arg2[%c0_1, %c0_2] : memref<2x1024xf32, #tpu.memory_space<vmem>>, vector<2x1024xf32>
    %cst_3 = arith.constant 0.000000e+00 : f32
    %4 = vector.broadcast %cst_3 : f32 to vector<2x1024xf32>
    %5 = arith.maximumf %3, %4 : vector<2x1024xf32>
    %6 = vector.broadcast %1 : f32 to vector<2x1024xf32>
    %7 = arith.cmpf olt, %5, %6 : vector<2x1024xf32>
    %8 = vector.broadcast %1 : f32 to vector<2x1024xf32>
    %9 = arith.select %7, %5, %8 : vector<2x1024xi1>, vector<2x1024xf32>
    %10 = vector.broadcast %2 : f32 to vector<2x1024xf32>
    %11 = arith.mulf %9, %10 : vector<2x1024xf32>
    %cst_4 = arith.constant 1.500000e+01 : f32
    %12 = vector.broadcast %cst_4 : f32 to vector<2x1024xf32>
    %13 = arith.mulf %12, %11 : vector<2x1024xf32>
    %14 = math.roundeven %13 : vector<2x1024xf32>
    %cst_5 = arith.constant 0.0666666701 : f32
    %15 = vector.broadcast %cst_5 : f32 to vector<2x1024xf32>
    %16 = arith.mulf %14, %15 : vector<2x1024xf32>
    %17 = vector.broadcast %1 : f32 to vector<2x1024xf32>
    %18 = arith.mulf %16, %17 : vector<2x1024xf32>
    %c0_6 = arith.constant 0 : index
    %c0_7 = arith.constant 0 : index
    %19 = vector.load %arg3[%c0_6, %c0_7] : memref<2x1024xf32, #tpu.memory_space<vmem>>, vector<2x1024xf32>
    tpu.vector_store %arg3[%c0_6, %c0_7], %18 {strides = array<i32>} : memref<2x1024xf32, #tpu.memory_space<vmem>>, vector<2x1024xf32>,
    return
  }
  func.func @transform_0(%arg0: i32) -> (i32, i32) {
    %c0_i32 = arith.constant 0 : i32
    %c0_i32_0 = arith.constant 0 : i32
    %c0_i32_1 = arith.constant 0 : i32
    return %c0_i32, %c0_i32_0 : i32, i32
  }
  func.func @transform_1(%arg0: i32) -> (i32, i32) {
    %c0_i32 = arith.constant 0 : i32
    %c0_i32_0 = arith.constant 0 : i32
    return %arg0, %c0_i32 : i32, i32
  }
  func.func @transform_2(%arg0: i32) -> (i32, i32) {
    %c0_i32 = arith.constant 0 : i32
    %c0_i32_0 = arith.constant 0 : i32
    return %arg0, %c0_i32 : i32, i32
  }
}

</mosaic_0001>

<bundles_post_ra>
// kernel: tpu_custom_call.1
= control target key start
LH: loop header
LB: loop body
LE: loop exit
PB: predicated region body
PF: predicated region fallthrough
CT: control target
= control target key end

     0   :  { %8 = vsyncpa [#allocation4], 0  ;;  %s167_s0 = inlined_call_operand.<no memory space> [shape: f32[1,1], index: 0, kind: input, shape index: {}]   ;;  %s168_s1 = inlined_call_operand.hbm [shape: f32[2,1024], index: 1, kind: input, shape index: {}]   ;;  %s169_s2 = inlined_call_operand.hbm [shape: f32[2,1024], index: 2, kind: output, shape index: {}]  }
   0x1   :  { %9 = vsyncpa [#allocation5], 0  ;;  %s123_s9 = smov [#allocation3]   ;;  %s75_s13 = scalar_lea.hbm %s168_s1, 256 }
   0x2   :  { %s18_s10 = sshll.u32 %s123_s9, 4  ;;  %p76_p0 = scmp.ne.s32.totalorder %s168_s1, %s75_s13  ;;  %s19_s10 = int_to_ptr.vmem [resolvable:$true] %s18_s10 }
   0x3   :  { %p79_p1 = scmp.lt.u32.totalorder %s75_s13, %s168_s1 }
   0x5   :  { %p81_p2 = pnand %p79_p1, %p76_p0 }
   0x7   :  { %84 = shalt.err (!%p81_p2)
}
   0x8   :  { %s85_s18 = scalar_lea.vmem %s19_s10, 256  ;;  %p90_p4 = scmp.lt.s32.totalorder %s19_s10, %s19_s10 }
   0x9   :  { %p86_p3 = scmp.ne.s32.totalorder %s19_s10, %s85_s18  ;;  %p91_p5 = scmp.lt.s32.totalorder %s85_s18, %s85_s18 }
   0xb   :  { %p92_p6 = por %p91_p5, %p90_p4 }
   0xd   :  { %p93_p7 = pnand %p92_p6, %p86_p3 }
   0xf   :  { %96 = shalt.err (!%p93_p7)
}
  0x10   :  { %21 = dma.hbm_to_vmem [thread:$0]  %s168_s1, 256, %s19_s10, [#allocation4]  }
  0x11   :  { %s26_s23 = sand.u32 2147483647, %s167_s0 }
  0x12   :  { %119 = dma.done.wait [#allocation4], 256  }
  0x13   :  { %120 = vsyncadd [#allocation4], 4294967040  ;;  %v27_v0 = vstv %s26_s23  ;;  %v30_v2 = vld [vmem:[#allocation3] sm:$0xff]  ;;  %v31_v3 = vld [vmem:[#allocation3 + $0x8] sm:$0xff]  ;;  %s124_s0 = smov [#allocation6]  }
  0x14   :  { %73 = vrcp.f32 %v27_v0  ;;  %v32_v4 = vmax.f32 %v30_v2, 0.0  ;;  %v33_v5 = vmax.f32 %v31_v3, 0.0  ;;  %s58_s1 = sshll.u32 %s124_s0, 4  ;;  %s59_s1 = int_to_ptr.vmem [resolvable:$true] %s58_s1 }
  0x15   :  { %s97_s25 = scalar_lea.vmem %s59_s1, 256  ;;  %p102_p9 = scmp.lt.s32.totalorder %s59_s1, %s59_s1 }
  0x16   :  { %vm35_vm0 = vcmp.lt.f32.partialorder %v32_v4, %v27_v0  ;;  %vm36_vm1 = vcmp.lt.f32.partialorder %v33_v5, %v27_v0  ;;  %p98_p8 = scmp.ne.s32.totalorder %s59_s1, %s97_s25  ;;  %p103_p10 = scmp.lt.s32.totalorder %s97_s25, %s97_s25 }
  0x17   :  { %v37_v6 = vsel %vm35_vm0, %v32_v4, %v27_v0  ;;  %v38_v7 = vsel %vm36_vm1, %v33_v5, %v27_v0 }
  0x18   :  { %p104_p11 = por %p103_p10, %p102_p9 }
  0x1a   :  { %p105_p12 = pnand %p104_p11, %p98_p8 }
  0x1e   :  { %v74_v1 = vpop.eup %73 }
  0x1f   :  { %67 = vpush %v74_v1 }
  0x50   :  { %s68_s24 = spop %67 }
  0x51   :  { %v39_v8 = vstv %s68_s24 }
  0x52   :  { %v40_v9 = vmul.f32 %v39_v8, %v37_v6  ;;  %v41_v10 = vmul.f32 %v39_v8, %v38_v7 }
  0x54   :  { %v42_v11 = vmul.f32 15.0, %v40_v9  ;;  %v43_v12 = vmul.f32 15.0, %v41_v10 }
  0x56   :  { %v69_v13 = vround.rtne.f32 %v42_v11  ;;  %v70_v14 = vround.rtne.f32 %v43_v12 }
  0x58   :  { %v46_v15 = vmul.f32 0.06666667, %v69_v13  ;;  %v47_v16 = vmul.f32 0.06666667, %v70_v14 }
  0x5a   :  { %v48_v17 = vmul.f32 %v46_v15, %v27_v0  ;;  %v49_v18 = vmul.f32 %v47_v16, %v27_v0 }
  0x5c   :  { %50 = vst [vmem:[#allocation6] sm:$0xff] %v48_v17  ;;  %51 = vst [vmem:[#allocation6 + $0x8] sm:$0xff] %v49_v18 }
  0x5d   :  { %108 = shalt.err (!%p105_p12)
}
  0x5e   :  { %s109_s28 = scalar_lea.hbm %s169_s2, 256 }
  0x5f   :  { %p110_p13 = scmp.ne.s32.totalorder %s169_s2, %s109_s28  ;;  %p113_p0 = scmp.lt.u32.totalorder %s109_s28, %s169_s2 }
  0x61   :  { %p115_p1 = pnand %p113_p0, %p110_p13 }
  0x63   :  { %118 = shalt.err (!%p115_p1)
}
  0x64   :  { %61 = dma.vmem_to_hbm [thread:$0]  %s59_s1, 256, %s169_s2, [#allocation5]  }
  0x65   :  { %121 = dma.done.wait [#allocation5], 256  }
  0x66   :  { %122 = vsyncadd [#allocation5], 4294967040 }
  0x67   :  { %65 = vsyncpa [#allocation4], 1 }
  0x68   :  { %66 = vsyncpa [#allocation5], 1 }

</bundles_post_ra>
